<compile_context>
chip_gen: v7x
topology: tpu7x:2x2x1
jax: 0.10.0
libtpu: 0.0.40
codegen_flags: <defaults>
</compile_context>

<pallas_src>
import functools

import jax
import jax.numpy as jnp
from jax.experimental import pallas as pl
from jax.experimental.pallas import tpu as pltpu


# ----------------------------------------------------------------------------- kernel
def _general_relu_kernel(x_ref, o_ref, *, leak, sub, maxv):
    x = x_ref[...]
    if leak is not None:
        # leaky_relu: x if x >= 0 else leak * x
        y = jnp.where(x >= 0, x, x * jnp.asarray(leak, x.dtype))
    else:
        y = jnp.maximum(x, jnp.asarray(0, x.dtype))
    if sub is not None:
        y = y - jnp.asarray(sub, x.dtype)
    if maxv is not None:
        y = jnp.minimum(y, jnp.asarray(maxv, x.dtype))
    o_ref[...] = y


def _general_relu_jnp(x, leak=None, sub=None, maxv=None):
    """Same math, plain jnp — used only for the <128-element tail / tiny inputs."""
    if leak is not None:
        y = jnp.where(x >= 0, x, x * jnp.asarray(leak, x.dtype))
    else:
        y = jnp.maximum(x, jnp.asarray(0, x.dtype))
    if sub is not None:
        y = y - jnp.asarray(sub, x.dtype)
    if maxv is not None:
        y = jnp.minimum(y, jnp.asarray(maxv, x.dtype))
    return y


# ----------------------------------------------------------------------------- tuning
def _tpu_generation_params():
    """Best-effort (multi_tensorcore, default_tile_bytes) from the device kind."""
    kind = ""
    try:
        devs = jax.devices()
        if devs:
            kind = (devs[0].device_kind or "").lower()
    except Exception:
        pass
    is_lite = ("lite" in kind) or ("v5e" in kind) or ("v6e" in kind) or ("trillium" in kind)
    is_v7 = "v7" in kind
    # Chips whose 2 TensorCores are fed from one Pallas grid via "parallel"
    # dimension semantics: v4 / v5p megacore and v7x.  v5e / v6e are single-TC.
    multi_tc = is_v7 or ((("v4" in kind) or ("v5p" in kind)) and not is_lite)
    # v7x: ~3.2 TB/s HBM but 64 MiB VMEM -> 8 MiB tiles (4 buffers = 32 MiB, headroom left).
    # v5e/v6e: per-step DMA time already dwarfs the ~0.35 us grid-step overhead at 4 MiB.
    tile_bytes = (8 if is_v7 else 4) * 1024 * 1024
    return multi_tc, tile_bytes


def _choose_block_rows(rows, sublane_pack, target_rows, multi_tc):
    """Pick the block row count: a multiple of `sublane_pack`, or exactly `rows`."""
    # Tiny array: a single block equal to the full array dim (always legal).
    if rows <= sublane_pack:
        return rows
    # Single-TensorCore chip and the whole array fits one tile: one block means
    # no extra grid steps / DMA boundaries.
    if not multi_tc and rows <= target_rows:
        return rows
    # Aim for ~target-sized tiles; on megacore chips use >= 2 blocks and prefer
    # an even block count so both TensorCores stay busy.
    nb = max(1, pl.cdiv(rows, target_rows))
    if multi_tc:
        nb = max(nb, 2)
        if nb % 2:
            nb += 1
    tr = pl.cdiv(pl.cdiv(rows, nb), sublane_pack) * sublane_pack
    tr = max(tr, sublane_pack)
    # Prefer a block size that divides `rows` exactly (full, unmasked last block),
    # searching a few sublane-pack steps below the target size.
    t = tr
    lower = max(sublane_pack, tr - 4 * sublane_pack)
    while t >= lower:
        if rows % t == 0:
            n_blocks = rows // t
            if (not multi_tc) or (n_blocks % 2 == 0) or (n_blocks >= 8):
                return t
        t -= sublane_pack
    return tr


# ----------------------------------------------------------------------------- wrapper
def general_relu(x, leak=None, sub=None, maxv=None, *,
                 target_tile_bytes=None, donate_input=False):
    """Applies GeneralRelu elementwise. x: any shape (e.g. NCHW)."""
    orig_shape = x.shape
    orig_dtype = x.dtype
    n = x.size
    if n == 0:
        return x

    lanes = 128
    itemsize = jnp.dtype(orig_dtype).itemsize
    # Packed sublane count: 8 for 4-byte, 16 for 2-byte, 32 for 1-byte dtypes.
    sublane_pack = max(8, 32 // itemsize)

    multi_tc, auto_tile_bytes = _tpu_generation_params()
    if target_tile_bytes is None:
        target_tile_bytes = auto_tile_bytes

    x_flat = x.reshape(-1)                 # free for contiguous arrays
    rows = n // lanes
    tail = n - rows * lanes

    # Fewer than 128 elements: not worth a kernel launch.
    if rows == 0:
        return _general_relu_jnp(x_flat, leak, sub, maxv).reshape(orig_shape)

    # Aligned prefix goes through the kernel as a lane-dense (rows, 128) slab.
    # No sublane-row padding: ragged last block is masked by Pallas.
    main = x_flat if tail == 0 else x_flat[: rows * lanes]
    x_2d = main.reshape(rows, lanes)

    bytes_per_row = lanes * itemsize
    target_rows = max(
        sublane_pack,
        (target_tile_bytes // bytes_per_row) // sublane_pack * sublane_pack,
    )
    tr = _choose_block_rows(rows, sublane_pack, target_rows, multi_tc)
    grid = (pl.cdiv(rows, tr),)

    kernel = functools.partial(_general_relu_kernel, leak=leak, sub=sub, maxv=maxv)

    out_2d = pl.pallas_call(
        kernel,
        out_shape=jax.ShapeDtypeStruct((rows, lanes), orig_dtype),
        grid=grid,
        in_specs=[pl.BlockSpec((tr, lanes), lambda i: (i, 0))],
        out_specs=pl.BlockSpec((tr, lanes), lambda i: (i, 0)),
        # Only alias input<->output when the caller actually donates the input
        # at a jit boundary; otherwise XLA would insert a defensive copy.
        input_output_aliases=({0: 0} if donate_input else {}),
        compiler_params=pltpu.CompilerParams(
            dimension_semantics=("parallel",),
            # Explicit limit safe for all generations (v7x has 64 MiB physical);
            # usage is <= 4x the tile (<= 32 MiB on v7x, <= 16 MiB elsewhere).
            vmem_limit_bytes=48 * 1024 * 1024,
        ),
    )(x_2d)

    if tail == 0:
        return out_2d.reshape(orig_shape)

    # <=127-element tail: tiny jnp expression, stitched back onto the kernel output.
    tail_out = _general_relu_jnp(x_flat[rows * lanes:], leak, sub, maxv)
    return jnp.concatenate([out_2d.reshape(-1), tail_out]).reshape(orig_shape)


# ----------------------------------------------------------------------------- reference / tests
def _reference(x, leak=None, sub=None, maxv=None):
    y = jnp.where(x >= 0, x, x * leak) if leak is not None else jnp.maximum(x, 0)
    if sub is not None:
        y = y - sub
    if maxv is not None:
        y = jnp.minimum(y, maxv)
    return y


if __name__ == "__main__":
    key = jax.random.PRNGKey(0)
    x = jax.random.normal(key, (2, 4, 16, 16), dtype=jnp.float32)  # NCHW

    # All branches of GeneralRelu(leak=0.1, sub=0.4, maxv=6.0)
    leak, sub, maxv = 0.1, 0.4, 6.0
    y = general_relu(x, leak=leak, sub=sub, maxv=maxv)
    jax.block_until_ready(y)
    y_ref = _reference(x, leak=leak, sub=sub, maxv=maxv)
    assert y.shape == x.shape and y.dtype == x.dtype
    assert jnp.allclose(y, y_ref, atol=1e-6), "mismatch vs reference"

    # Plain-relu path (leak=None)
    y2 = general_relu(x)
    jax.block_until_ready(y2)
    assert jnp.allclose(y2, _reference(x), atol=1e-6), "relu path mismatch"

    # Unaligned-size path (n % 128 != 0): kernel on aligned prefix + jnp tail.
    x3 = jax.random.normal(jax.random.PRNGKey(1), (3, 5, 7, 11), dtype=jnp.float32)
    y3 = general_relu(x3, leak=leak, sub=sub, maxv=maxv)
    jax.block_until_ready(y3)
    assert jnp.allclose(y3, _reference(x3, leak, sub, maxv), atol=1e-6), "tail path mismatch"

    # Ragged-last-block path: rows not a multiple of the block rows (masked write),
    # forced multi-block via a tiny tile target.
    x4 = jax.random.normal(jax.random.PRNGKey(2), (36, 128), dtype=jnp.float32)
    y4 = general_relu(x4, leak=leak, sub=sub, maxv=maxv, target_tile_bytes=8 * 1024)
    jax.block_until_ready(y4)
    assert jnp.allclose(y4, _reference(x4, leak, sub, maxv), atol=1e-6), "ragged block mismatch"

    # bf16 path (dtype-aware sublane packing)
    xb = x.astype(jnp.bfloat16)
    yb = general_relu(xb, leak=leak, sub=sub, maxv=maxv)
    jax.block_until_ready(yb)
    assert yb.dtype == jnp.bfloat16
    assert jnp.allclose(yb.astype(jnp.float32),
                        _reference(xb, leak, sub, maxv).astype(jnp.float32),
                        atol=1e-2), "bf16 path mismatch"

    print("KERNEL_OK")
</pallas_src>

<mosaic_0001>
module attributes {stable_mosaic.version = 11 : i64} {
  func.func @_general_relu_kernel(%arg0: i32, %arg1: memref<16x128xf32, #tpu.memory_space<vmem>>, %arg2: memref<16x128xf32, #tpu.memory_space<vmem>>) attributes {dimension_semantics = [#tpu.dimension_semantics<parallel>], iteration_bounds = array<i64: 1>, scalar_prefetch = 0 : i64, scratch_operands = 0 : i64, tpu.core_type = #tpu.core_type<tc>, window_params = [{transform_indices = @transform_0, window_bounds = array<i64: 16, 128>}, {transform_indices = @transform_1, window_bounds = array<i64: 16, 128>}]} {
    %c0 = arith.constant 0 : index
    %c0_0 = arith.constant 0 : index
    %0 = vector.load %arg1[%c0, %c0_0] : memref<16x128xf32, #tpu.memory_space<vmem>>, vector<16x128xf32>
    %cst = arith.constant 0.000000e+00 : f32
    %1 = vector.broadcast %cst : f32 to vector<16x128xf32>
    %2 = arith.cmpf oge, %0, %1 : vector<16x128xf32>
    %cst_1 = arith.constant 1.000000e-01 : f32
    %3 = vector.broadcast %cst_1 : f32 to vector<16x128xf32>
    %4 = arith.mulf %0, %3 : vector<16x128xf32>
    %5 = arith.select %2, %0, %4 : vector<16x128xi1>, vector<16x128xf32>
    %cst_2 = arith.constant 4.000000e-01 : f32
    %6 = vector.broadcast %cst_2 : f32 to vector<16x128xf32>
    %7 = arith.subf %5, %6 : vector<16x128xf32>
    %cst_3 = arith.constant 6.000000e+00 : f32
    %8 = vector.broadcast %cst_3 : f32 to vector<16x128xf32>
    %9 = arith.minimumf %7, %8 : vector<16x128xf32>
    %c0_4 = arith.constant 0 : index
    %c0_5 = arith.constant 0 : index
    %10 = vector.load %arg2[%c0_4, %c0_5] : memref<16x128xf32, #tpu.memory_space<vmem>>, vector<16x128xf32>
    tpu.vector_store %arg2[%c0_4, %c0_5], %9 {strides = array<i32>} : memref<16x128xf32, #tpu.memory_space<vmem>>, vector<16x128xf32>,
    return
  }
  func.func @transform_0(%arg0: i32) -> (i32, i32) {
    %c0_i32 = arith.constant 0 : i32
    %c0_i32_0 = arith.constant 0 : i32
    return %arg0, %c0_i32 : i32, i32
  }
  func.func @transform_1(%arg0: i32) -> (i32, i32) {
    %c0_i32 = arith.constant 0 : i32
    %c0_i32_0 = arith.constant 0 : i32
    return %arg0, %c0_i32 : i32, i32
  }
}

</mosaic_0001>

<bundles_post_ra>
// kernel: tpu_custom_call.1
= control target key start
LH: loop header
LB: loop body
LE: loop exit
PB: predicated region body
PF: predicated region fallthrough
CT: control target
= control target key end

     0   :  { %6 = vsyncpa [#allocation3], 0  ;;  %s152_s0 = inlined_call_operand.hbm [shape: f32[16,128], index: 0, kind: input, shape index: {}]   ;;  %s153_s1 = inlined_call_operand.hbm [shape: f32[16,128], index: 1, kind: output, shape index: {}]  }
   0x1   :  { %7 = vsyncpa [#allocation4], 0  ;;  %s108_s6 = smov [#allocation2]   ;;  %s60_s10 = scalar_lea.hbm %s152_s0, 256 }
   0x2   :  { %s13_s7 = sshll.u32 %s108_s6, 4  ;;  %p61_p0 = scmp.ne.s32.totalorder %s152_s0, %s60_s10  ;;  %s14_s7 = int_to_ptr.vmem [resolvable:$true] %s13_s7 }
   0x3   :  { %p64_p1 = scmp.lt.u32.totalorder %s60_s10, %s152_s0 }
   0x5   :  { %p66_p2 = pnand %p64_p1, %p61_p0 }
   0x7   :  { %69 = shalt.err (!%p66_p2)
}
   0x8   :  { %s70_s15 = scalar_lea.vmem %s14_s7, 256  ;;  %p75_p4 = scmp.lt.s32.totalorder %s14_s7, %s14_s7 }
   0x9   :  { %p71_p3 = scmp.ne.s32.totalorder %s14_s7, %s70_s15  ;;  %p76_p5 = scmp.lt.s32.totalorder %s70_s15, %s70_s15 }
   0xb   :  { %p77_p6 = por %p76_p5, %p75_p4 }
   0xd   :  { %p78_p7 = pnand %p77_p6, %p71_p3 }
   0xf   :  { %81 = shalt.err (!%p78_p7)
}
  0x10   :  { %s109_s16 = smov 128   ;;  %s110_s17 = smov 8  }
  0x11   :  { %19 = dma.hbm_to_vmem [thread:$0]  %s152_s0, 256, %s14_s7, [#allocation3], %s109_s16, %s109_s16, %s110_s17  }
  0x12   :  { %104 = dma.done.wait [#allocation3], 256  }
  0x13   :  { %105 = vsyncadd [#allocation3], 4294967040  ;;  %v23_v0 = vld [vmem:[#allocation2] sm:$0xff]  ;;  %v24_v1 = vld [vmem:[#allocation2 + $0x8] sm:$0xff]  ;;  %s111_s20 = smov [#allocation5]  }
  0x14   :  { %vm25_vm0 = vcmp.ge.f32.partialorder %v23_v0, 0.0  ;;  %v27_v2 = vmul.f32 0.1, %v23_v0  ;;  %vm26_vm1 = vcmp.ge.f32.partialorder %v24_v1, 0.0  ;;  %v28_v3 = vmul.f32 0.1, %v24_v1 }
  0x15   :  { %s42_s21 = sshll.u32 %s111_s20, 4  ;;  %s43_s21 = int_to_ptr.vmem [resolvable:$true] %s42_s21 }
  0x16   :  { %v29_v4 = vsel %vm25_vm0, %v23_v0, %v27_v2  ;;  %v30_v5 = vsel %vm26_vm1, %v24_v1, %v28_v3  ;;  %s82_s0 = scalar_lea.vmem %s43_s21, 256  ;;  %p87_p9 = scmp.lt.s32.totalorder %s43_s21, %s43_s21 }
  0x17   :  { %v54_v6 = vadd.f32 -0.4, %v29_v4  ;;  %v55_v7 = vadd.f32 -0.4, %v30_v5  ;;  %p83_p8 = scmp.ne.s32.totalorder %s43_s21, %s82_s0  ;;  %p88_p10 = scmp.lt.s32.totalorder %s82_s0, %s82_s0 }
  0x19   :  { %v33_v8 = vmin.f32 %v54_v6, 6.0  ;;  %v34_v9 = vmin.f32 %v55_v7, 6.0  ;;  %p89_p11 = por %p88_p10, %p87_p9 }
  0x1b   :  { %35 = vst [vmem:[#allocation5] sm:$0xff] %v33_v8  ;;  %36 = vst [vmem:[#allocation5 + $0x8] sm:$0xff] %v34_v9  ;;  %p90_p12 = pnand %p89_p11, %p83_p8 }
  0x1d   :  { %93 = shalt.err (!%p90_p12)
}
  0x1e   :  { %s94_s24 = scalar_lea.hbm %s153_s1, 256 }
  0x1f   :  { %p95_p13 = scmp.ne.s32.totalorder %s153_s1, %s94_s24  ;;  %p98_p0 = scmp.lt.u32.totalorder %s94_s24, %s153_s1 }
  0x21   :  { %p100_p1 = pnand %p98_p0, %p95_p13 }
  0x23   :  { %103 = shalt.err (!%p100_p1)
}
  0x24   :  { %48 = dma.vmem_to_hbm [thread:$0]  %s43_s21, 256, %s153_s1, [#allocation4], %s109_s16, %s109_s16, %s110_s17  }
  0x25   :  { %106 = dma.done.wait [#allocation4], 256  }
  0x26   :  { %107 = vsyncadd [#allocation4], 4294967040 }
  0x27   :  { %52 = vsyncpa [#allocation3], 1 }
  0x28   :  { %53 = vsyncpa [#allocation4], 1 }

</bundles_post_ra>
